<compile_context>
chip_gen: v7x
topology: tpu7x:2x2x1
jax: 0.10.0
libtpu: 0.0.40
codegen_flags: <defaults>
</compile_context>

<pallas_src>
import functools

import jax
import jax.numpy as jnp
from jax.experimental import pallas as pl
from jax.experimental.pallas import tpu as pltpu

BN_EPS = 1e-5
LANE = 128      # TPU vreg lane width (last-dim tiling quantum)
SUBLANE = 8     # f32 sublane group (second-to-last-dim tiling quantum)

# Per-grid-step VMEM working-set budget (double-buffering included).
# Conservative for every generation: v5e default scoped limit is 16 MiB,
# v7x is 32 MiB scoped / 64 MiB physical, v6e has plenty of headroom.
_VMEM_STEP_BUDGET = 8 * 1024 * 1024
_ROW_TILE_CAP = 2048   # 1024-2048 is the measured mem-bound sweet spot


def _round_up(a, b):
    return (a + b - 1) // b * b


# ---------------------------------------------------------------------------
# Kernels
# ---------------------------------------------------------------------------
def _fused_conv_bn_relu_kernel(p_ref, w_ref, g_ref, b_ref, o_ref, *, m_valid):
    """Single-launch path (whole problem resident in VMEM).

    p_ref : (K, Mp)    im2col patches, pixels on lanes (K = 9*Cin)
    w_ref : (Co8, K)   folded conv weight, Cout padded to a sublane multiple
    g_ref : (Co8, 1)   BN gamma
    b_ref : (Co8, 1)   BN beta
    o_ref : (Co8, Mp)  ReLU(BN(conv(x)))

    Zero-padded patch columns contribute exactly 0 to the raw sums, so
    dividing by m_valid (not Mp) yields the exact batch statistics — no mask.
    The conv bias is omitted: it cancels identically through train-mode BN.
    """
    y = jnp.dot(w_ref[...], p_ref[...], preferred_element_type=jnp.float32)
    inv_m = 1.0 / m_valid
    mean = jnp.sum(y, axis=-1, keepdims=True) * inv_m
    var = jnp.sum(y * y, axis=-1, keepdims=True) * inv_m - mean * mean
    inv_std = jax.lax.rsqrt(jnp.maximum(var, 0.0) + BN_EPS)
    scale = g_ref[...] * inv_std
    shift = b_ref[...] - mean * scale
    o_ref[...] = jnp.maximum(y * scale + shift, 0.0)


def _conv_stats_kernel(p_ref, w_ref, y_ref, s_ref, ss_ref):
    """Tiled pass 1: conv tile (one matmul) + per-tile BN partial sums.

    p_ref  : (K, TM)   patch tile
    w_ref  : (Co8, K)  folded weight
    y_ref  : (Co8, TM) conv output tile (lane-dense store)
    s_ref  : (Co8, 1)  partial sum over this tile's pixels
    ss_ref : (Co8, 1)  partial sum of squares
    """
    y = jnp.dot(w_ref[...], p_ref[...], preferred_element_type=jnp.float32)
    y_ref[...] = y
    s_ref[...] = jnp.sum(y, axis=-1, keepdims=True)
    ss_ref[...] = jnp.sum(y * y, axis=-1, keepdims=True)


def _bn_relu_kernel(y_ref, sc_ref, sh_ref, o_ref):
    """Tiled pass 2: y * scale + shift, then ReLU (lane-dense elementwise)."""
    o_ref[...] = jnp.maximum(y_ref[...] * sc_ref[...] + sh_ref[...], 0.0)


# ---------------------------------------------------------------------------
# Wrapper
# ---------------------------------------------------------------------------
@jax.jit
def single_conv_forward(x_nchw, weight, bias, gamma, beta):
    """single_conv forward: Conv2d(3x3, s1, p1, bias) + BatchNorm2d (training-
    mode batch statistics) + ReLU.

    x_nchw: (N, Cin, H, W) f32; weight: (Cout, Cin, 3, 3);
    bias/gamma/beta: (Cout,). Returns (N, Cout, H, W) f32.

    `bias` is accepted for interface parity but is mathematically a no-op:
    a conv bias feeding train-mode BatchNorm cancels exactly in (y - mean(y)),
    so the kernels never read it.
    """
    del bias
    N, Cin, H, W = x_nchw.shape
    Cout = weight.shape[0]
    K = 9 * Cin
    M = N * H * W
    Co8 = _round_up(Cout, SUBLANE)

    # ---- wrapper glue (XLA): im2col in the transposed (K, M) layout --------
    x = jnp.transpose(x_nchw, (0, 2, 3, 1)).astype(jnp.float32)      # NHWC
    x_pad = jnp.pad(x, ((0, 0), (1, 1), (1, 1), (0, 0)))
    taps = [x_pad[:, dy:dy + H, dx:dx + W, :]
            for dy in range(3) for dx in range(3)]
    patches = jnp.concatenate(taps, axis=-1).reshape(M, K).T          # (K, M)

    # (Cout, Cin, kh, kw) -> (Cout, kh, kw, Cin) -> (Cout, 9*Cin) -> pad rows
    w_mat = jnp.transpose(weight, (0, 2, 3, 1)).reshape(Cout, K)
    w_mat = jnp.pad(w_mat.astype(jnp.float32), ((0, Co8 - Cout), (0, 0)))
    g_col = jnp.pad(gamma.astype(jnp.float32), (0, Co8 - Cout),
                    constant_values=1.0).reshape(Co8, 1)
    b_col = jnp.pad(beta.astype(jnp.float32),
                    (0, Co8 - Cout)).reshape(Co8, 1)

    bytes_per_col = 4 * (K + Co8)          # one patch column + one y/out column

    # ------------------ path A: single fused launch (small M) ----------------
    Mp1 = _round_up(M, LANE)
    if 2 * bytes_per_col * Mp1 <= _VMEM_STEP_BUDGET:
        p_pad = jnp.pad(patches, ((0, 0), (0, Mp1 - M)))
        out_flat = pl.pallas_call(
            functools.partial(_fused_conv_bn_relu_kernel, m_valid=M),
            out_shape=jax.ShapeDtypeStruct((Co8, Mp1), jnp.float32),
            grid=(1,),
            in_specs=[
                pl.BlockSpec((K, Mp1), lambda i: (0, 0)),
                pl.BlockSpec((Co8, K), lambda i: (0, 0)),
                pl.BlockSpec((Co8, 1), lambda i: (0, 0)),
                pl.BlockSpec((Co8, 1), lambda i: (0, 0)),
            ],
            out_specs=pl.BlockSpec((Co8, Mp1), lambda i: (0, 0)),
            compiler_params=pltpu.CompilerParams(
                dimension_semantics=("arbitrary",)),
            cost_estimate=pl.CostEstimate(
                flops=2 * Co8 * K * Mp1 + 8 * Co8 * Mp1,
                transcendentals=Co8,
                bytes_accessed=4 * (K * Mp1 + Co8 * K + 2 * Co8 + Co8 * Mp1)),
        )(p_pad, w_mat, g_col, b_col)
    else:
        # ------------------ path B: tiled two-pass (large M) -----------------
        # Row tile from the VMEM budget (double-buffered), capped at 2048 and
        # kept a multiple of the 128-lane width.
        tm = _VMEM_STEP_BUDGET // (2 * bytes_per_col)
        tm = max(LANE, min(_ROW_TILE_CAP, (tm // LANE) * LANE))
        tm = min(tm, _round_up(M, LANE))
        n_tiles = -(-M // tm)
        Mp = n_tiles * tm
        p_pad = jnp.pad(patches, ((0, 0), (0, Mp - M)))

        y_flat, psum, psumsq = pl.pallas_call(
            _conv_stats_kernel,
            out_shape=(jax.ShapeDtypeStruct((Co8, Mp), jnp.float32),
                       jax.ShapeDtypeStruct((n_tiles * Co8, 1), jnp.float32),
                       jax.ShapeDtypeStruct((n_tiles * Co8, 1), jnp.float32)),
            grid=(n_tiles,),
            in_specs=[pl.BlockSpec((K, tm), lambda i: (0, i)),
                      pl.BlockSpec((Co8, K), lambda i: (0, 0))],
            out_specs=(pl.BlockSpec((Co8, tm), lambda i: (0, i)),
                       pl.BlockSpec((Co8, 1), lambda i: (i, 0)),
                       pl.BlockSpec((Co8, 1), lambda i: (i, 0))),
            compiler_params=pltpu.CompilerParams(
                dimension_semantics=("parallel",)),
            cost_estimate=pl.CostEstimate(
                flops=2 * Co8 * K * Mp + 3 * Co8 * Mp,
                transcendentals=0,
                bytes_accessed=4 * (K * Mp + Co8 * K + Co8 * Mp
                                    + 2 * n_tiles * Co8)),
        )(p_pad, w_mat)

        # Tiny cross-tile reduction + BN coefficient fold (XLA). Padded patch
        # columns contributed exactly 0, so divide by the true M — no mask.
        tot = jnp.sum(psum.reshape(n_tiles, Co8), axis=0)
        tot_sq = jnp.sum(psumsq.reshape(n_tiles, Co8), axis=0)
        mean = tot / M
        var = jnp.maximum(tot_sq / M - mean * mean, 0.0)
        inv_std = jax.lax.rsqrt(var + BN_EPS)
        scale = (g_col[:, 0] * inv_std).reshape(Co8, 1)
        shift = (b_col[:, 0] - mean * g_col[:, 0] * inv_std).reshape(Co8, 1)

        out_flat = pl.pallas_call(
            _bn_relu_kernel,
            out_shape=jax.ShapeDtypeStruct((Co8, Mp), jnp.float32),
            grid=(n_tiles,),
            in_specs=[pl.BlockSpec((Co8, tm), lambda i: (0, i)),
                      pl.BlockSpec((Co8, 1), lambda i: (0, 0)),
                      pl.BlockSpec((Co8, 1), lambda i: (0, 0))],
            out_specs=pl.BlockSpec((Co8, tm), lambda i: (0, i)),
            compiler_params=pltpu.CompilerParams(
                dimension_semantics=("parallel",)),
            cost_estimate=pl.CostEstimate(
                flops=3 * Co8 * Mp,
                transcendentals=0,
                bytes_accessed=4 * (2 * Co8 * Mp + 2 * Co8)),
        )(y_flat, scale, shift)

    # ---- wrapper glue: strip padding, back to NCHW --------------------------
    out = out_flat[:Cout, :M].reshape(Cout, N, H, W)
    return jnp.transpose(out, (1, 0, 2, 3))


def _reference(x_nchw, weight, bias, gamma, beta):
    """Plain-JAX reference (conv + bias + train-mode BN + ReLU)."""
    y = jax.lax.conv_general_dilated(
        x_nchw, weight, window_strides=(1, 1), padding=((1, 1), (1, 1)),
        dimension_numbers=("NCHW", "OIHW", "NCHW"))
    y = y + bias[None, :, None, None]
    mean = jnp.mean(y, axis=(0, 2, 3), keepdims=True)
    var = jnp.mean((y - mean) ** 2, axis=(0, 2, 3), keepdims=True)
    y = (y - mean) * jax.lax.rsqrt(var + BN_EPS)
    y = y * gamma[None, :, None, None] + beta[None, :, None, None]
    return jnp.maximum(y, 0.0)


def _run_case(key, N, Cin, Cout, H, W):
    kx, kw, kb = jax.random.split(key, 3)
    x = jax.random.normal(kx, (N, Cin, H, W), dtype=jnp.float32)
    fan_in = Cin * 3 * 3
    wbound = 1.0 / jnp.sqrt(fan_in)
    weight = jax.random.uniform(kw, (Cout, Cin, 3, 3), jnp.float32,
                                minval=-wbound, maxval=wbound)
    bias = jax.random.uniform(kb, (Cout,), jnp.float32,
                              minval=-wbound, maxval=wbound)
    gamma = jnp.ones((Cout,), jnp.float32)   # BatchNorm2d default init
    beta = jnp.zeros((Cout,), jnp.float32)

    out = jax.block_until_ready(
        single_conv_forward(x, weight, bias, gamma, beta))
    ref = _reference(x, weight, bias, gamma, beta)
    assert out.shape == (N, Cout, H, W)
    assert jnp.allclose(out, ref, atol=5e-4, rtol=5e-4), "mismatch vs reference"


if __name__ == "__main__":
    key = jax.random.PRNGKey(0)
    k1, k2 = jax.random.split(key)

    # Shipped toy shape for single_conv(ch_in=4, ch_out=8): fused single-launch path.
    _run_case(k1, N=2, Cin=4, Cout=8, H=16, W=16)

    # Larger shape (with non-multiple-of-8 Cout) to exercise the tiled
    # two-pass path, column padding and channel padding.
    _run_case(k2, N=2, Cin=16, Cout=5, H=60, W=60)

    print("KERNEL_OK")
</pallas_src>

<mosaic_0001>
module attributes {stable_mosaic.version = 11 : i64} {
  func.func @_fused_conv_bn_relu_kernel(%arg0: i32, %arg1: memref<36x512xf32, #tpu.memory_space<vmem>>, %arg2: memref<8x36xf32, #tpu.memory_space<vmem>>, %arg3: memref<8x1xf32, #tpu.memory_space<vmem>>, %arg4: memref<8x1xf32, #tpu.memory_space<vmem>>, %arg5: memref<8x512xf32, #tpu.memory_space<vmem>>) attributes {dimension_semantics = [#tpu.dimension_semantics<arbitrary>], iteration_bounds = array<i64: 1>, scalar_prefetch = 0 : i64, scratch_operands = 0 : i64, tpu.core_type = #tpu.core_type<tc>, window_params = [{pipeline_mode = #tpu.pipeline_mode<synchronous>, transform_indices = @transform_0, window_bounds = array<i64: 36, 512>}, {pipeline_mode = #tpu.pipeline_mode<synchronous>, transform_indices = @transform_1, window_bounds = array<i64: 8, 36>}, {pipeline_mode = #tpu.pipeline_mode<synchronous>, transform_indices = @transform_2, window_bounds = array<i64: 8, 1>}, {pipeline_mode = #tpu.pipeline_mode<synchronous>, transform_indices = @transform_3, window_bounds = array<i64: 8, 1>}, {pipeline_mode = #tpu.pipeline_mode<synchronous>, transform_indices = @transform_4, window_bounds = array<i64: 8, 512>}]} {
    %c0 = arith.constant 0 : index
    %c0_0 = arith.constant 0 : index
    %0 = vector.load %arg2[%c0, %c0_0] : memref<8x36xf32, #tpu.memory_space<vmem>>, vector<8x36xf32>
    %c0_1 = arith.constant 0 : index
    %c0_2 = arith.constant 0 : index
    %1 = vector.load %arg1[%c0_1, %c0_2] : memref<36x512xf32, #tpu.memory_space<vmem>>, vector<36x512xf32>
    %cst = arith.constant dense<0.000000e+00> : vector<8x512xf32>
    %2 = tpu.matmul %0, %1, %cst {dimension_numbers = #tpu.dot_dimension_numbers<[1], [0], [0], [1], [0, 0, 1, 1], [], []>} : vector<8x36xf32>, vector<36x512xf32>, vector<8x512xf32> -> vector<8x512xf32>
    %cst_3 = arith.constant dense<0.000000e+00> : vector<8xf32>
    %3 = vector.multi_reduction <add>, %2, %cst_3 [1] : vector<8x512xf32> to vector<8xf32>
    %4 = vector.shape_cast %3 : vector<8xf32> to vector<8x1xf32>
    %cst_4 = arith.constant 0.001953125 : f32
    %5 = vector.broadcast %cst_4 : f32 to vector<8x1xf32>
    %6 = arith.mulf %4, %5 : vector<8x1xf32>
    %7 = arith.mulf %2, %2 : vector<8x512xf32>
    %cst_5 = arith.constant dense<0.000000e+00> : vector<8xf32>
    %8 = vector.multi_reduction <add>, %7, %cst_5 [1] : vector<8x512xf32> to vector<8xf32>
    %9 = vector.shape_cast %8 : vector<8xf32> to vector<8x1xf32>
    %cst_6 = arith.constant 0.001953125 : f32
    %10 = vector.broadcast %cst_6 : f32 to vector<8x1xf32>
    %11 = arith.mulf %9, %10 : vector<8x1xf32>
    %12 = arith.mulf %6, %6 : vector<8x1xf32>
    %13 = arith.subf %11, %12 : vector<8x1xf32>
    %cst_7 = arith.constant 0.000000e+00 : f32
    %14 = vector.broadcast %cst_7 : f32 to vector<8x1xf32>
    %15 = arith.maximumf %13, %14 : vector<8x1xf32>
    %cst_8 = arith.constant 9.99999974E-6 : f32
    %16 = vector.broadcast %cst_8 : f32 to vector<8x1xf32>
    %17 = arith.addf %15, %16 : vector<8x1xf32>
    %18 = math.rsqrt %17 : vector<8x1xf32>
    %c0_9 = arith.constant 0 : index
    %c0_10 = arith.constant 0 : index
    %19 = vector.load %arg3[%c0_9, %c0_10] : memref<8x1xf32, #tpu.memory_space<vmem>>, vector<8x1xf32>
    %20 = arith.mulf %19, %18 : vector<8x1xf32>
    %c0_11 = arith.constant 0 : index
    %c0_12 = arith.constant 0 : index
    %21 = vector.load %arg4[%c0_11, %c0_12] : memref<8x1xf32, #tpu.memory_space<vmem>>, vector<8x1xf32>
    %22 = arith.mulf %6, %20 : vector<8x1xf32>
    %23 = arith.subf %21, %22 : vector<8x1xf32>
    %24 = vector.broadcast %20 : vector<8x1xf32> to vector<8x512xf32>
    %25 = arith.mulf %2, %24 : vector<8x512xf32>
    %26 = vector.broadcast %23 : vector<8x1xf32> to vector<8x512xf32>
    %27 = arith.addf %25, %26 : vector<8x512xf32>
    %cst_13 = arith.constant 0.000000e+00 : f32
    %28 = vector.broadcast %cst_13 : f32 to vector<8x512xf32>
    %29 = arith.maximumf %27, %28 : vector<8x512xf32>
    %c0_14 = arith.constant 0 : index
    %c0_15 = arith.constant 0 : index
    %30 = vector.load %arg5[%c0_14, %c0_15] : memref<8x512xf32, #tpu.memory_space<vmem>>, vector<8x512xf32>
    tpu.vector_store %arg5[%c0_14, %c0_15], %29 {strides = array<i32>} : memref<8x512xf32, #tpu.memory_space<vmem>>, vector<8x512xf32>,
    return
  }
  func.func @transform_0(%arg0: i32) -> (i32, i32) {
    %c0_i32 = arith.constant 0 : i32
    %c0_i32_0 = arith.constant 0 : i32
    %c0_i32_1 = arith.constant 0 : i32
    return %c0_i32, %c0_i32_0 : i32, i32
  }
  func.func @transform_1(%arg0: i32) -> (i32, i32) {
    %c0_i32 = arith.constant 0 : i32
    %c0_i32_0 = arith.constant 0 : i32
    %c0_i32_1 = arith.constant 0 : i32
    return %c0_i32, %c0_i32_0 : i32, i32
  }
  func.func @transform_2(%arg0: i32) -> (i32, i32) {
    %c0_i32 = arith.constant 0 : i32
    %c0_i32_0 = arith.constant 0 : i32
    %c0_i32_1 = arith.constant 0 : i32
    return %c0_i32, %c0_i32_0 : i32, i32
  }
  func.func @transform_3(%arg0: i32) -> (i32, i32) {
    %c0_i32 = arith.constant 0 : i32
    %c0_i32_0 = arith.constant 0 : i32
    %c0_i32_1 = arith.constant 0 : i32
    return %c0_i32, %c0_i32_0 : i32, i32
  }
  func.func @transform_4(%arg0: i32) -> (i32, i32) {
    %c0_i32 = arith.constant 0 : i32
    %c0_i32_0 = arith.constant 0 : i32
    %c0_i32_1 = arith.constant 0 : i32
    return %c0_i32, %c0_i32_0 : i32, i32
  }
}

</mosaic_0001>

<bundles_post_ra>
// kernel: single_conv_forward.1
= control target key start
LH: loop header
LB: loop body
LE: loop exit
PB: predicated region body
PF: predicated region fallthrough
CT: control target
= control target key end

     0   :  { %v281_v3 = vmov 0.0   ;;  %vm42_vm0 = vcmask 1043456   ;;  %vm38_vm1 = vcmask 293888   ;;  %v282_v44 = vmov 0   ;;  %s389_s0 = inlined_call_operand.vmem [shape: f32[36,512], index: 0, kind: input, shape index: {}]   ;;  %s390_s1 = inlined_call_operand.vmem [shape: f32[8,36], index: 1, kind: input, shape index: {}]   ;;  %s391_s2 = inlined_call_operand.vmem [shape: f32[8,1], index: 2, kind: input, shape index: {}]   ;;  %s392_s3 = inlined_call_operand.vmem [shape: f32[8,1], index: 3, kind: input, shape index: {}]   ;;  %s393_s4 = inlined_call_operand.vmem [shape: f32[8,512], index: 4, kind: output, shape index: {}]  }
   0x1   :  { %v19_v0 = vld [vmem:[%s389_s0 + $0x8] sm:$0xff]  ;;  %v18_v2 = vld [vmem:[%s389_s0] sm:$0xff]  ;;  %119 = vmatprep.mubr.f32.mxu0 %v281_v3  ;;  %190 = vmatprep.mubr.f32.mxu1 %v281_v3  ;;  %v21_v6 = vld [vmem:[%s389_s0 + $0x18] sm:$0xff] }
   0x2   :  { %v23_v1 = vld [vmem:[%s389_s0 + $0x28] sm:$0xff]  ;;  %v22_v5 = vld [vmem:[%s389_s0 + $0x20] sm:$0xff]  ;;  %v25_v7 = vld [vmem:[%s389_s0 + $0x38] sm:$0xff]  ;;  %277 = vset.pattern.permute.xlu1 %v282_v44  ;;  %278 = vset.pattern.permute.xlu0 %v282_v44 }
   0x3   :  { %v259_v4 = vpack.c.bf16 %v23_v1, %v19_v0  ;;  %v261_v8 = vpack.c.bf16 %v22_v5, %v18_v2  ;;  %v267_v9 = vpack.c.bf16 %v25_v7, %v21_v6  ;;  %v20_v10 = vld [vmem:[%s389_s0 + $0x10] sm:$0xff]  ;;  %v27_v12 = vld [vmem:[%s389_s0 + $0x48] sm:$0xff]  ;;  %v26_v15 = vld [vmem:[%s389_s0 + $0x40] sm:$0xff] }
   0x4   :  { %v24_v11 = vld [vmem:[%s389_s0 + $0x30] sm:$0xff]  ;;  %v31_v14 = vld [vmem:[%s389_s0 + $0x68] sm:$0xff]  ;;  %v30_v16 = vld [vmem:[%s389_s0 + $0x60] sm:$0xff] }
   0x5   :  { %260 = vmatprep.subr.bf16.mxu0 %v259_v4  ;;  %v269_v13 = vpack.c.bf16 %v24_v11, %v20_v10  ;;  %268 = vmatprep.subr.bf16.mxu1 %v267_v9  ;;  %v263_v17 = vpack.c.bf16 %v31_v14, %v27_v12  ;;  %v265_v18 = vpack.c.bf16 %v30_v16, %v26_v15  ;;  %v29_v19 = vld [vmem:[%s389_s0 + $0x58] sm:$0xff]  ;;  %v28_v21 = vld [vmem:[%s389_s0 + $0x50] sm:$0xff]  ;;  %v35_v25 = vld [vmem:[%s389_s0 + $0x88] sm:$0xf] }
   0x6   :  { %262 = vmatpush1.bf16.msra.mxu0 %v261_v8  ;;  %v33_v20 = vld [vmem:[%s389_s0 + $0x78] sm:$0xff]  ;;  %v32_v23 = vld [vmem:[%s389_s0 + $0x70] sm:$0xff]  ;;  %v34_v27 = vld [vmem:[%s389_s0 + $0x80] sm:$0xf] }
   0x7   :  { %270 = vmatpush1.bf16.msra.mxu1 %v269_v13  ;;  %v271_v22 = vpack.c.bf16 %v33_v20, %v29_v19  ;;  %264 = vmatprep.subr.bf16.mxu0 %v263_v17  ;;  %v273_v24 = vpack.c.bf16 %v32_v23, %v28_v21  ;;  %v37_v26 = vld [vmem:[%s389_s0 + $0x98] sm:$0xf]  ;;  %v17_v28 = vld [vmem:[%s390_s1] sm:$0xff]  ;;  %v36_v29 = vld [vmem:[%s389_s0 + $0x90] sm:$0xf] }
   0x8   :  { %v218_v53 = vld [vmem:[%s391_s2] sm:$0xff] }
   0x9   :  { %272 = vmatprep.subr.bf16.mxu1 %v271_v22  ;;  %v220_v56 = vld [vmem:[%s392_s3] sm:$0xff] }
   0xa   :  { %266 = vmatpush1.bf16.msra.mxu0 %v265_v18 }
   0xb   :  { %274 = vmatpush1.bf16.msra.mxu1 %v273_v24  ;;  %253 = vmatprep.subr.msk.mxu0 %vm42_vm0, %v35_v25 }
   0xc   :  { %256 = vmatprep.subr.msk.mxu1 %vm42_vm0, %v37_v26 }
   0xe   :  { %254 = vmatpush1.msk.msra.mxu0 %vm42_vm0, %v34_v27 }
   0xf   :  { %255 = vmatmul.mubr.msk.f32.vlgmr.msra.gmra.mrb[0].mxu0 %vm38_vm1, %v17_v28  ;;  %257 = vmatpush1.msk.msra.mxu1 %vm42_vm0, %v36_v29 }
  0x10   :  { %258 = vmatmul.mubr.msk.f32.vlgmr.msra.gmra.mrb[0].mxu1 %vm38_vm1, %v17_v28 }
  0xe2   :  { %v121_v30 = vpop.f32.mrb[0].mxu0 }
  0xe3   :  { %v203_v31 = vmul.f32 %v121_v30, %v121_v30  ;;  %v123_v32 = vpop.f32.mrb[1].mxu0  ;;  %v192_v33 = vpop.f32.mrb[0].mxu1 }
  0xe4   :  { %v197_v34 = vadd.f32 %v123_v32, %v121_v30  ;;  %v204_v35 = vmul.f32 %v123_v32, %v123_v32  ;;  %v205_v36 = vmul.f32 %v192_v33, %v192_v33  ;;  %v194_v37 = vpop.f32.mrb[1].mxu1 }
  0xe5   :  { %v206_v40 = vmul.f32 %v194_v37, %v194_v37 }
  0xe6   :  { %v207_v38 = vadd.f32 %v204_v35, %v203_v31  ;;  %v198_v39 = vadd.f32 %v197_v34, %v192_v33 }
  0xe8   :  { %v199_v41 = vadd.f32 %v198_v39, %v194_v37  ;;  %v208_v42 = vadd.f32 %v207_v38, %v205_v36 }
  0xea   :  { %200 = vadd.xlane.f32.xlu0 %v199_v41  ;;  %v209_v43 = vadd.f32 %v208_v42, %v206_v40 }
  0xee   :  { %210 = vadd.xlane.f32.xlu0 %v209_v43 }
 0x177   :  { %v201_v45 = vpop.xlane.xlu0 %200 }
 0x178   :  { %v202_v46 = vmul.f32 0.001953125, %v201_v45 }
 0x17a   :  { %v213_v48 = vmul.f32 %v202_v46, %v202_v46 }
 0x17b   :  { %v211_v47 = vpop.xlane.xlu0 %210 }
 0x17c   :  { %v212_v49 = vmul.f32 0.001953125, %v211_v47 }
 0x17e   :  { %v214_v50 = vsub.f32 %v212_v49, %v213_v48 }
 0x180   :  { %v215_v51 = vmax.f32 %v214_v50, 0.0 }
 0x182   :  { %v216_v52 = vadd.f32 1e-05, %v215_v51 }
 0x184   :  { %279 = vrsqrt.f32 %v216_v52 }
 0x18e   :  { %v280_v54 = vpop.eup %279 }
 0x18f   :  { %v219_v55 = vmul.f32 %v280_v54, %v218_v53 }
 0x191   :  { %225 = vperm.xlu1 %277, %v219_v55   ;;  %v221_v57 = vmul.f32 %v219_v55, %v202_v46 }
 0x193   :  { %v222_v58 = vsub.f32 %v220_v56, %v221_v57 }
 0x195   :  { %234 = vperm.xlu1 %277, %v222_v58  }
 0x210   :  { %v226_v59 = vpop.permute.xlu1 %225 }
 0x211   :  { %v228_v60 = vmul.f32 %v226_v59, %v121_v30  ;;  %v229_v61 = vmul.f32 %v226_v59, %v123_v32  ;;  %v230_v62 = vmul.f32 %v226_v59, %v192_v33  ;;  %v231_v63 = vmul.f32 %v226_v59, %v194_v37 }
 0x214   :  { %v235_v0 = vpop.permute.xlu1 %234 }
 0x215   :  { %v237_v1 = vadd.f32 %v235_v0, %v228_v60  ;;  %v238_v2 = vadd.f32 %v235_v0, %v229_v61  ;;  %v239_v3 = vadd.f32 %v235_v0, %v230_v62  ;;  %v240_v4 = vadd.f32 %v235_v0, %v231_v63 }
 0x217   :  { %v241_v5 = vmax.f32 %v237_v1, 0.0  ;;  %v242_v6 = vmax.f32 %v238_v2, 0.0  ;;  %v243_v7 = vmax.f32 %v239_v3, 0.0  ;;  %v244_v8 = vmax.f32 %v240_v4, 0.0 }
 0x219   :  { %245 = vst [vmem:[%s393_s4] sm:$0xff] %v241_v5  ;;  %246 = vst [vmem:[%s393_s4 + $0x8] sm:$0xff] %v242_v6 }
 0x21a   :  { %247 = vst [vmem:[%s393_s4 + $0x10] sm:$0xff] %v243_v7  ;;  %248 = vst [vmem:[%s393_s4 + $0x18] sm:$0xff] %v244_v8 }

</bundles_post_ra>
